<compile_context>
chip_gen: v7x
topology: tpu7x:2x2x1
jax: 0.10.0
libtpu: 0.0.40
codegen_flags: <defaults>
</compile_context>

<pallas_src>
import math

import jax
import jax.numpy as jnp
from jax.experimental import pallas as pl
from jax.experimental.pallas import tpu as pltpu

# ---------------------------- problem sizes ----------------------------
N = 2                  # batch
C = 4                  # d_model
H = 16
W = 16
MAX_SHAPE = (256, 256)
NORM = True


# ---------------------------- pe buffer (mirrors module __init__) ----------------------------
def make_pe(d_model=C, max_shape=MAX_SHAPE, norm=NORM):
    """Exactly mirrors PositionEncodingSine.__init__; returns [d_model, *max_shape]."""
    mh, mw = max_shape
    ones = jnp.ones(max_shape, jnp.float32)
    y_position = jnp.cumsum(ones, axis=0)[None]          # [1, mh, mw]
    x_position = jnp.cumsum(ones, axis=1)[None]          # [1, mh, mw]
    if norm:
        y_position = y_position / mh
        x_position = x_position / mw
    div_term = jnp.exp(
        jnp.arange(0, d_model // 2, 2, dtype=jnp.float32)
        * (-math.log(10000.0) / (d_model // 2)))
    div_term = div_term[:, None, None]                   # [ceil(d_model/4), 1, 1]
    pe = jnp.zeros((d_model, mh, mw), jnp.float32)
    pe = pe.at[0::4].set(jnp.sin(x_position * div_term))
    pe = pe.at[1::4].set(jnp.cos(x_position * div_term))
    pe = pe.at[2::4].set(jnp.sin(y_position * div_term))
    pe = pe.at[3::4].set(jnp.cos(y_position * div_term))
    return pe


def make_pe_tiled(pe_full, n, c, h, w):
    """Build-time constant: slice to (h, w), flatten lane-dense, pre-tile over batch.

    Returns [n*c, h*w] float32 (8 KiB for the default sizes). Done ONCE, not per call.
    """
    pe_slice = pe_full[:c, :h, :w].reshape(c, h * w)     # [C, HW]
    return jnp.tile(pe_slice, (n, 1))                    # [N*C, HW]


# ---------------------------- Pallas kernel ----------------------------
def _add_pe_kernel(x_ref, pe_ref, o_ref):
    # x_ref, pe_ref, o_ref: [N*C, HW] in VMEM — identical layouts, plain elementwise add.
    o_ref[...] = x_ref[...] + pe_ref[...]


@jax.jit
def position_encoding_sine_forward(x_nchw, pe_tiled):
    """x_nchw: [N, C, H, W]; pe_tiled: [N*C, H*W] constant. Returns x + pe (NCHW)."""
    n, c, h, w = x_nchw.shape
    # Collapse (N, C) into the sublane axis and (H, W) into the lane axis:
    # [8, 256] = one full (8,128)x2 f32 tile group -> unmasked vld/vst.
    x_flat = x_nchw.reshape(n * c, h * w)
    out = pl.pallas_call(
        _add_pe_kernel,
        out_shape=jax.ShapeDtypeStruct(x_flat.shape, x_flat.dtype),
        in_specs=[
            pl.BlockSpec(memory_space=pltpu.MemorySpace.VMEM),
            pl.BlockSpec(memory_space=pltpu.MemorySpace.VMEM),
        ],
        out_specs=pl.BlockSpec(memory_space=pltpu.MemorySpace.VMEM),
    )(x_flat, pe_tiled)
    return out.reshape(n, c, h, w)


# ---------------------------- pure-JAX reference ----------------------------
def reference_forward(x_nchw, pe_full):
    n, c, h, w = x_nchw.shape
    return x_nchw + pe_full[None, :, :h, :w]


# ---------------------------- main ----------------------------
if __name__ == "__main__":
    key = jax.random.PRNGKey(0)
    x0 = jax.random.normal(key, (N, C, H, W), jnp.float32)   # NCHW, like the PyTorch module

    # Build-time constants (mirror of the registered buffer + pre-sliced/tiled slab).
    pe_full = make_pe()                                       # [4, 256, 256]
    pe_tiled = make_pe_tiled(pe_full, N, C, H, W)             # [8, 256]

    out = position_encoding_sine_forward(x0, pe_tiled)
    out = jax.block_until_ready(out)

    ref = reference_forward(x0, pe_full)
    err = float(jnp.max(jnp.abs(out - ref)))
    assert out.shape == (N, C, H, W) and out.dtype == jnp.float32
    assert err < 1e-6, f"max abs err {err}"
    print("KERNEL_OK")
</pallas_src>

<mosaic_0001>
module attributes {stable_mosaic.version = 11 : i64} {
  func.func @_add_pe_kernel(%arg0: memref<8x256xf32, #tpu.memory_space<vmem>>, %arg1: memref<8x256xf32, #tpu.memory_space<vmem>>, %arg2: memref<8x256xf32, #tpu.memory_space<vmem>>) attributes {dimension_semantics = [], scalar_prefetch = 0 : i64, scratch_operands = 0 : i64, tpu.core_type = #tpu.core_type<tc>} {
    %c0 = arith.constant 0 : index
    %c0_0 = arith.constant 0 : index
    %0 = vector.load %arg0[%c0, %c0_0] : memref<8x256xf32, #tpu.memory_space<vmem>>, vector<8x256xf32>
    %c0_1 = arith.constant 0 : index
    %c0_2 = arith.constant 0 : index
    %1 = vector.load %arg1[%c0_1, %c0_2] : memref<8x256xf32, #tpu.memory_space<vmem>>, vector<8x256xf32>
    %2 = arith.addf %0, %1 : vector<8x256xf32>
    %c0_3 = arith.constant 0 : index
    %c0_4 = arith.constant 0 : index
    %3 = vector.load %arg2[%c0_3, %c0_4] : memref<8x256xf32, #tpu.memory_space<vmem>>, vector<8x256xf32>
    tpu.vector_store %arg2[%c0_3, %c0_4], %2 {strides = array<i32>} : memref<8x256xf32, #tpu.memory_space<vmem>>, vector<8x256xf32>,
    return
  }
}

</mosaic_0001>

<bundles_post_ra>
// kernel: position_encoding_sine_forward.1
= control target key start
LH: loop header
LB: loop body
LE: loop exit
PB: predicated region body
PF: predicated region fallthrough
CT: control target
= control target key end

     0   :  { %s56_s0 = inlined_call_operand.vmem [shape: f32[8,256], index: 0, kind: input, shape index: {}]   ;;  %s57_s1 = inlined_call_operand.vmem [shape: f32[8,256], index: 1, kind: input, shape index: {}]   ;;  %s58_s2 = inlined_call_operand.vmem [shape: f32[8,256], index: 2, kind: output, shape index: {}]  }
   0x1   :  { %v11_v0 = vld [vmem:[%s56_s0] sm:$0xff]  ;;  %v12_v2 = vld [vmem:[%s56_s0 + $0x8] sm:$0xff] }
   0x2   :  { %v13_v1 = vld [vmem:[%s57_s1] sm:$0xff]  ;;  %v14_v4 = vld [vmem:[%s57_s1 + $0x8] sm:$0xff] }
   0x3   :  { %v15_v3 = vadd.f32 %v13_v1, %v11_v0  ;;  %v16_v5 = vadd.f32 %v14_v4, %v12_v2 }
   0x5   :  { %17 = vst [vmem:[%s58_s2] sm:$0xff] %v15_v3  ;;  %18 = vst [vmem:[%s58_s2 + $0x8] sm:$0xff] %v16_v5 }

</bundles_post_ra>
